<compile_context>
chip_gen: v7x
topology: tpu7x:2x2x1
jax: 0.10.0
libtpu: 0.0.40
codegen_flags: <defaults>
</compile_context>

<pallas_src>
import jax
import jax.numpy as jnp
from jax import lax
from jax.experimental import pallas as pl
from jax.experimental.pallas import tpu as pltpu

TEMPERATURE = 0.07
INV_T = 1.0 / TEMPERATURE
_NORM_EPS = 1e-12  # matches torch F.normalize default eps


def _clip_loss_kernel(img_ref, txt_ref, loss_ref,
                      txt_n_ref, col_acc_ref, row_acc_ref):
    i = pl.program_id(0)
    n_steps = pl.num_programs(0)
    tm = img_ref.shape[0]
    b = txt_ref.shape[0]

    # --- one-time setup: normalize text into resident VMEM, zero accumulators.
    @pl.when(i == 0)
    def _init():
        txt = txt_ref[...].astype(jnp.float32)
        ss = jnp.sum(txt * txt, axis=-1, keepdims=True)
        inv = lax.rsqrt(jnp.maximum(ss, _NORM_EPS * _NORM_EPS))
        txt_n_ref[...] = (txt * inv).astype(txt_n_ref.dtype)
        col_acc_ref[...] = jnp.zeros_like(col_acc_ref)
        row_acc_ref[...] = jnp.zeros_like(row_acc_ref)

    # --- normalize this image row tile; fold 1/temperature into the scale.
    img = img_ref[...].astype(jnp.float32)
    ss = jnp.sum(img * img, axis=-1, keepdims=True)
    inv = lax.rsqrt(jnp.maximum(ss, _NORM_EPS * _NORM_EPS)) * INV_T
    img_n = (img * inv).astype(txt_n_ref.dtype)          # (TM, D), already / T

    txt_n = txt_n_ref[...]                               # (B, D)

    # logits tile = img_n @ txt_n.T without materializing a transpose.
    logits = lax.dot_general(
        img_n, txt_n, (((1,), (1,)), ((), ())),
        preferred_element_type=jnp.float32)              # (TM, B)

    # Diagonal logits for this tile, computed directly (rows of this image tile
    # pair with text rows [i*TM, i*TM + TM)).
    row0 = pl.multiple_of(i * tm, tm)
    txt_tile = txt_n_ref[pl.ds(row0, tm), :].astype(jnp.float32)
    diag = jnp.sum(img_n.astype(jnp.float32) * txt_tile,
                   axis=-1, keepdims=True)               # (TM, 1)

    # Single exp pass: inputs are L2-normalized so |logits| <= 1/T; a constant
    # shift keeps exp in (0, 1] with no max reductions.
    # TODO(synk): if temperature becomes learnable / inputs unnormalized, this
    # bound no longer holds and a real max subtraction is needed.
    e = jnp.exp(logits - INV_T)                          # (TM, B)

    # Image->text direction: lane reduction per row.  The diagonal is shared by
    # both CE directions, so subtract it twice here and halve at the end.
    row_sum = jnp.sum(e, axis=-1, keepdims=True)         # (TM, 1)
    row_acc_ref[...] += jnp.sum(jnp.log(row_sum) - 2.0 * diag, keepdims=True)

    # Text->image direction: per-column exp sums via the (nearly idle) MXU
    # instead of a sublane-axis reduction.  The ones operand has 8 identical
    # rows to keep it sublane-aligned; all 8 accumulator rows hold the same
    # column sums, which the final mean accounts for.
    sum_ones = jnp.ones((8, tm), jnp.float32)
    col_part = jnp.dot(sum_ones, e, preferred_element_type=jnp.float32)  # (8, B)
    col_acc_ref[...] += col_part

    # --- finalize on the last row tile.
    @pl.when(i == n_steps - 1)
    def _finalize():
        # mean over 8 identical rows == mean over the B column LSE terms.
        col_lse_mean = jnp.mean(jnp.log(col_acc_ref[...]))
        loss11 = 0.5 * (row_acc_ref[...] * (1.0 / b)) + 0.5 * col_lse_mean + INV_T
        loss_ref[0, 0] = loss11[0, 0]


def _pick_row_tile(b):
    # Largest MXU-friendly row tile that evenly divides the batch; fall back to
    # one full-batch block for small / odd batch sizes (block == full array dim
    # satisfies the (8, 128) tiling rule).
    for tm in (256, 128, 64, 32, 16, 8):
        if b % tm == 0:
            return tm
    return b


def clip_contrastive_loss(image_features, text_features):
    """Pallas implementation of CLIPContrastiveLoss.forward. Returns scalar f32."""
    assert image_features.shape == text_features.shape
    assert image_features.ndim == 2
    b, d = image_features.shape
    tm = _pick_row_tile(b)
    grid = (b // tm,)

    # Feed the MXU bf16 operands when the inputs are bf16 (f32 accumulation);
    # keep f32 otherwise.
    mat_dtype = jnp.bfloat16 if image_features.dtype == jnp.bfloat16 else jnp.float32
    in_bytes = jnp.dtype(image_features.dtype).itemsize
    mat_bytes = jnp.dtype(mat_dtype).itemsize

    # Rough VMEM footprint; only raise the scoped limit when the default
    # (16/32 MiB depending on generation) would not be enough.
    est = (2 * tm * d * in_bytes          # double-buffered image tile
           + 2 * b * d * in_bytes         # resident text input
           + b * d * mat_bytes            # normalized text scratch
           + 4 * (4 * tm * b)             # logits / exp temporaries
           + 4 * (8 * b + 64))            # accumulators
    params = {"dimension_semantics": ("arbitrary",)}
    if est > 24 * 1024 * 1024:
        params["vmem_limit_bytes"] = int(min(est * 3 // 2, 110 * 1024 * 1024))
    compiler_params = pltpu.CompilerParams(**params)

    out = pl.pallas_call(
        _clip_loss_kernel,
        out_shape=jax.ShapeDtypeStruct((1, 1), jnp.float32),
        grid=grid,
        in_specs=[
            pl.BlockSpec((tm, d), lambda i: (i, 0)),   # streamed image row tile
            pl.BlockSpec((b, d), lambda i: (0, 0)),    # full text, stays resident
        ],
        out_specs=pl.BlockSpec(memory_space=pltpu.SMEM),
        scratch_shapes=[
            pltpu.VMEM((b, d), mat_dtype),     # normalized text features
            pltpu.VMEM((8, b), jnp.float32),   # lane-dense column exp-sum acc
            pltpu.VMEM((1, 1), jnp.float32),   # row-direction scalar acc
        ],
        compiler_params=compiler_params,
    )(image_features, text_features)
    return out[0, 0]


def _reference_loss(image_features, text_features, temperature=TEMPERATURE):
    # Pure-JAX reference mirroring the PyTorch module (for sanity checking).
    def norm(x):
        n = jnp.sqrt(jnp.sum(x * x, axis=-1, keepdims=True))
        return x / jnp.maximum(n, _NORM_EPS)

    img = norm(image_features.astype(jnp.float32))
    txt = norm(text_features.astype(jnp.float32))
    logits = img @ txt.T / temperature
    bsz = logits.shape[0]
    labels = jnp.arange(bsz)
    lse_r = jax.scipy.special.logsumexp(logits, axis=1)
    lse_c = jax.scipy.special.logsumexp(logits, axis=0)
    diag = logits[labels, labels]
    return 0.5 * (jnp.mean(lse_r - diag) + jnp.mean(lse_c - diag))


if __name__ == "__main__":
    key = jax.random.PRNGKey(0)
    k_img, k_txt = jax.random.split(key)
    batch, hidden = 8, 32
    image_features = jax.random.normal(k_img, (batch, hidden), dtype=jnp.float32)
    text_features = jax.random.normal(k_txt, (batch, hidden), dtype=jnp.float32)

    loss = clip_contrastive_loss(image_features, text_features)
    jax.block_until_ready(loss)

    ref = _reference_loss(image_features, text_features)
    assert jnp.allclose(loss, ref, rtol=1e-4, atol=1e-4), (loss, ref)

    print("KERNEL_OK")
</pallas_src>

<mosaic_0001>
module attributes {stable_mosaic.version = 11 : i64} {
  func.func @_clip_loss_kernel(%arg0: i32, %arg1: memref<8x32xf32, #tpu.memory_space<vmem>>, %arg2: memref<8x32xf32, #tpu.memory_space<vmem>>, %arg3: memref<1x1xf32, #tpu.memory_space<smem>>, %arg4: memref<8x32xf32, #tpu.memory_space<vmem>>, %arg5: memref<8x8xf32, #tpu.memory_space<vmem>>, %arg6: memref<1x1xf32, #tpu.memory_space<vmem>>) attributes {dimension_semantics = [#tpu.dimension_semantics<arbitrary>], iteration_bounds = array<i64: 1>, scalar_prefetch = 0 : i64, scratch_operands = 3 : i64, tpu.core_type = #tpu.core_type<tc>, window_params = [{transform_indices = @transform_0, window_bounds = array<i64: 8, 32>}, {pipeline_mode = #tpu.pipeline_mode<synchronous>, transform_indices = @transform_1, window_bounds = array<i64: 8, 32>}, {transform_indices = @transform_2, window_bounds = array<i64: 1, 1>}]} {
    %c0_i32 = arith.constant 0 : i32
    %0 = arith.cmpi eq, %arg0, %c0_i32 : i32
    %1 = arith.extui %0 : i1 to i32
    %c0_i32_0 = arith.constant 0 : i32
    %2 = arith.cmpi ne, %1, %c0_i32_0 : i32
    scf.if %2 {
      %c0_25 = arith.constant 0 : index
      %c0_26 = arith.constant 0 : index
      %48 = vector.load %arg2[%c0_25, %c0_26] : memref<8x32xf32, #tpu.memory_space<vmem>>, vector<8x32xf32>
      %49 = arith.mulf %48, %48 : vector<8x32xf32>
      %cst_27 = arith.constant dense<0.000000e+00> : vector<8xf32>
      %50 = vector.multi_reduction <add>, %49, %cst_27 [1] : vector<8x32xf32> to vector<8xf32>
      %51 = vector.shape_cast %50 : vector<8xf32> to vector<8x1xf32>
      %cst_28 = arith.constant 1.000000e-24 : f32
      %52 = vector.broadcast %cst_28 : f32 to vector<8x1xf32>
      %53 = arith.maximumf %51, %52 : vector<8x1xf32>
      %54 = math.rsqrt %53 : vector<8x1xf32>
      %55 = vector.broadcast %54 : vector<8x1xf32> to vector<8x32xf32>
      %56 = arith.mulf %48, %55 : vector<8x32xf32>
      %c0_29 = arith.constant 0 : index
      %c0_30 = arith.constant 0 : index
      %57 = vector.load %arg4[%c0_29, %c0_30] : memref<8x32xf32, #tpu.memory_space<vmem>>, vector<8x32xf32>
      tpu.vector_store %arg4[%c0_29, %c0_30], %56 {strides = array<i32>} : memref<8x32xf32, #tpu.memory_space<vmem>>, vector<8x32xf32>,
      %cst_31 = arith.constant 0.000000e+00 : f32
      %58 = vector.broadcast %cst_31 : f32 to vector<8x8xf32>
      %c0_32 = arith.constant 0 : index
      %c0_33 = arith.constant 0 : index
      %59 = vector.load %arg5[%c0_32, %c0_33] : memref<8x8xf32, #tpu.memory_space<vmem>>, vector<8x8xf32>
      tpu.vector_store %arg5[%c0_32, %c0_33], %58 {strides = array<i32>} : memref<8x8xf32, #tpu.memory_space<vmem>>, vector<8x8xf32>,
      %cst_34 = arith.constant 0.000000e+00 : f32
      %60 = vector.broadcast %cst_34 : f32 to vector<1x1xf32>
      %c0_35 = arith.constant 0 : index
      %c0_36 = arith.constant 0 : index
      %61 = vector.load %arg6[%c0_35, %c0_36] : memref<1x1xf32, #tpu.memory_space<vmem>>, vector<1x1xf32>
      tpu.vector_store %arg6[%c0_35, %c0_36], %60 {strides = array<i32>} : memref<1x1xf32, #tpu.memory_space<vmem>>, vector<1x1xf32>,
    } else {
    }
    %c0 = arith.constant 0 : index
    %c0_1 = arith.constant 0 : index
    %3 = vector.load %arg1[%c0, %c0_1] : memref<8x32xf32, #tpu.memory_space<vmem>>, vector<8x32xf32>
    %4 = arith.mulf %3, %3 : vector<8x32xf32>
    %cst = arith.constant dense<0.000000e+00> : vector<8xf32>
    %5 = vector.multi_reduction <add>, %4, %cst [1] : vector<8x32xf32> to vector<8xf32>
    %6 = vector.shape_cast %5 : vector<8xf32> to vector<8x1xf32>
    %cst_2 = arith.constant 1.000000e-24 : f32
    %7 = vector.broadcast %cst_2 : f32 to vector<8x1xf32>
    %8 = arith.maximumf %6, %7 : vector<8x1xf32>
    %9 = math.rsqrt %8 : vector<8x1xf32>
    %cst_3 = arith.constant 14.2857141 : f32
    %10 = vector.broadcast %cst_3 : f32 to vector<8x1xf32>
    %11 = arith.mulf %9, %10 : vector<8x1xf32>
    %12 = vector.broadcast %11 : vector<8x1xf32> to vector<8x32xf32>
    %13 = arith.mulf %3, %12 : vector<8x32xf32>
    %c0_4 = arith.constant 0 : index
    %c0_5 = arith.constant 0 : index
    %14 = vector.load %arg4[%c0_4, %c0_5] : memref<8x32xf32, #tpu.memory_space<vmem>>, vector<8x32xf32>
    %cst_6 = arith.constant dense<0.000000e+00> : vector<8x8xf32>
    %15 = tpu.matmul %13, %14, %cst_6 {dimension_numbers = #tpu.dot_dimension_numbers<[1], [1], [0], [0], [0, 0, 1, 0], [], []>} : vector<8x32xf32>, vector<8x32xf32>, vector<8x8xf32> -> vector<8x8xf32>
    %c8_i32 = arith.constant 8 : i32
    %16 = arith.muli %arg0, %c8_i32 : i32
    %17 = tpu.assume_multiple %16, 8 : i32
    %18 = arith.index_cast %17 : i32 to index
    %c0_7 = arith.constant 0 : index
    %19 = vector.load %arg4[%18, %c0_7] : memref<8x32xf32, #tpu.memory_space<vmem>>, vector<8x32xf32>
    %20 = arith.mulf %13, %19 : vector<8x32xf32>
    %cst_8 = arith.constant dense<0.000000e+00> : vector<8xf32>
    %21 = vector.multi_reduction <add>, %20, %cst_8 [1] : vector<8x32xf32> to vector<8xf32>
    %22 = vector.shape_cast %21 : vector<8xf32> to vector<8x1xf32>
    %cst_9 = arith.constant 14.2857141 : f32
    %23 = vector.broadcast %cst_9 : f32 to vector<8x8xf32>
    %24 = arith.subf %15, %23 : vector<8x8xf32>
    %25 = math.exp %24 : vector<8x8xf32>
    %cst_10 = arith.constant dense<0.000000e+00> : vector<8xf32>
    %26 = vector.multi_reduction <add>, %25, %cst_10 [1] : vector<8x8xf32> to vector<8xf32>
    %27 = vector.shape_cast %26 : vector<8xf32> to vector<8x1xf32>
    %c0_11 = arith.constant 0 : index
    %c0_12 = arith.constant 0 : index
    %28 = vector.load %arg6[%c0_11, %c0_12] : memref<1x1xf32, #tpu.memory_space<vmem>>, vector<1x1xf32>
    %29 = math.log %27 : vector<8x1xf32>
    %cst_13 = arith.constant 2.000000e+00 : f32
    %30 = vector.broadcast %cst_13 : f32 to vector<8x1xf32>
    %31 = arith.mulf %30, %22 : vector<8x1xf32>
    %32 = arith.subf %29, %31 : vector<8x1xf32>
    %33 = vector.shape_cast %32 : vector<8x1xf32> to vector<1x8x1xf32>
    %cst_14 = arith.constant dense<0.000000e+00> : vector<1xf32>
    %34 = vector.multi_reduction <add>, %33, %cst_14 [1, 2] : vector<1x8x1xf32> to vector<1xf32>
    %35 = vector.shape_cast %34 : vector<1xf32> to vector<1x1x1xf32>
    %36 = vector.extract %35[0, 0, 0] : f32 from vector<1x1x1xf32>
    %37 = vector.broadcast %36 : f32 to vector<1x1xf32>
    %38 = arith.addf %28, %37 : vector<1x1xf32>
    %c0_15 = arith.constant 0 : index
    %c0_16 = arith.constant 0 : index
    %39 = vector.load %arg6[%c0_15, %c0_16] : memref<1x1xf32, #tpu.memory_space<vmem>>, vector<1x1xf32>
    tpu.vector_store %arg6[%c0_15, %c0_16], %38 {strides = array<i32>} : memref<1x1xf32, #tpu.memory_space<vmem>>, vector<1x1xf32>,
    %cst_17 = arith.constant 1.000000e+00 : f32
    %40 = vector.broadcast %cst_17 : f32 to vector<8x8xf32>
    %cst_18 = arith.constant dense<0.000000e+00> : vector<8x8xf32>
    %41 = tpu.matmul %40, %25, %cst_18 {dimension_numbers = #tpu.dot_dimension_numbers<[1], [0], [0], [1], [0, 0, 1, 1], [], []>} : vector<8x8xf32>, vector<8x8xf32>, vector<8x8xf32> -> vector<8x8xf32>
    %c0_19 = arith.constant 0 : index
    %c0_20 = arith.constant 0 : index
    %42 = vector.load %arg5[%c0_19, %c0_20] : memref<8x8xf32, #tpu.memory_space<vmem>>, vector<8x8xf32>
    %43 = arith.addf %42, %41 : vector<8x8xf32>
    %c0_21 = arith.constant 0 : index
    %c0_22 = arith.constant 0 : index
    %44 = vector.load %arg5[%c0_21, %c0_22] : memref<8x8xf32, #tpu.memory_space<vmem>>, vector<8x8xf32>
    tpu.vector_store %arg5[%c0_21, %c0_22], %43 {strides = array<i32>} : memref<8x8xf32, #tpu.memory_space<vmem>>, vector<8x8xf32>,
    %c0_i32_23 = arith.constant 0 : i32
    %45 = arith.cmpi eq, %arg0, %c0_i32_23 : i32
    %46 = arith.extui %45 : i1 to i32
    %c0_i32_24 = arith.constant 0 : i32
    %47 = arith.cmpi ne, %46, %c0_i32_24 : i32
    scf.if %47 {
      %c0_25 = arith.constant 0 : index
      %c0_26 = arith.constant 0 : index
      %48 = vector.load %arg5[%c0_25, %c0_26] : memref<8x8xf32, #tpu.memory_space<vmem>>, vector<8x8xf32>
      %49 = math.log %48 : vector<8x8xf32>
      %50 = vector.shape_cast %49 : vector<8x8xf32> to vector<1x8x8xf32>
      %cst_27 = arith.constant dense<0.000000e+00> : vector<1xf32>
      %51 = vector.multi_reduction <add>, %50, %cst_27 [1, 2] : vector<1x8x8xf32> to vector<1xf32>
      %52 = vector.shape_cast %51 : vector<1xf32> to vector<1x1x1xf32>
      %53 = vector.extract %52[0, 0, 0] : f32 from vector<1x1x1xf32>
      %cst_28 = arith.constant 6.400000e+01 : f32
      %54 = arith.divf %53, %cst_28 : f32
      %c0_29 = arith.constant 0 : index
      %c0_30 = arith.constant 0 : index
      %55 = vector.load %arg6[%c0_29, %c0_30] : memref<1x1xf32, #tpu.memory_space<vmem>>, vector<1x1xf32>
      %cst_31 = arith.constant 1.250000e-01 : f32
      %56 = vector.broadcast %cst_31 : f32 to vector<1x1xf32>
      %57 = arith.mulf %55, %56 : vector<1x1xf32>
      %cst_32 = arith.constant 5.000000e-01 : f32
      %58 = vector.broadcast %cst_32 : f32 to vector<1x1xf32>
      %59 = arith.mulf %58, %57 : vector<1x1xf32>
      %cst_33 = arith.constant 5.000000e-01 : f32
      %60 = arith.mulf %cst_33, %54 : f32
      %61 = vector.broadcast %60 : f32 to vector<1x1xf32>
      %62 = arith.addf %59, %61 : vector<1x1xf32>
      %cst_34 = arith.constant 14.2857141 : f32
      %63 = vector.broadcast %cst_34 : f32 to vector<1x1xf32>
      %64 = arith.addf %62, %63 : vector<1x1xf32>
      %65 = vector.extract %64[0, 0] : f32 from vector<1x1xf32>
      %c0_35 = arith.constant 0 : index
      %c0_36 = arith.constant 0 : index
      %66 = memref.load %arg3[%c0_35, %c0_36] : memref<1x1xf32, #tpu.memory_space<smem>>
      memref.store %65, %arg3[%c0_35, %c0_36] : memref<1x1xf32, #tpu.memory_space<smem>>
    } else {
    }
    return
  }
  func.func @transform_0(%arg0: i32) -> (i32, i32) {
    %c0_i32 = arith.constant 0 : i32
    %c0_i32_0 = arith.constant 0 : i32
    return %arg0, %c0_i32 : i32, i32
  }
  func.func @transform_1(%arg0: i32) -> (i32, i32) {
    %c0_i32 = arith.constant 0 : i32
    %c0_i32_0 = arith.constant 0 : i32
    %c0_i32_1 = arith.constant 0 : i32
    return %c0_i32, %c0_i32_0 : i32, i32
  }
  func.func @transform_2(%arg0: i32) -> (i32, i32) {
    %c0_i32 = arith.constant 0 : i32
    %c0_i32_0 = arith.constant 0 : i32
    %c0_i32_1 = arith.constant 0 : i32
    return %c0_i32, %c0_i32_0 : i32, i32
  }
}

</mosaic_0001>

<bundles_post_ra>
// kernel: tpu_custom_call.1
= control target key start
LH: loop header
LB: loop body
LE: loop exit
PB: predicated region body
PF: predicated region fallthrough
CT: control target
= control target key end

     0   :  { %7 = vsyncpa [#allocation6], 0  ;;  %s465_s0 = inlined_call_operand.hbm [shape: f32[8,32], index: 0, kind: input, shape index: {}]   ;;  %s466_s1 = inlined_call_operand.hbm [shape: f32[8,32], index: 1, kind: input, shape index: {}]   ;;  %s467_s2 = inlined_call_operand.hbm [shape: f32[1,1], index: 2, kind: output, shape index: {}]  }
   0x1   :  { %8 = vsyncpa [#allocation9], 0 }
   0x2   :  { %9 = vsyncpa [#allocation7], 0  ;;  %s395_s9 = smov [#allocation5]   ;;  %s396_s11 = smov [#allocation8]  }
   0x3   :  { %s16_s10 = sshll.u32 %s395_s9, 4  ;;  %s26_s12 = sshll.u32 %s396_s11, 4  ;;  %s17_s10 = int_to_ptr.vmem [resolvable:$true] %s16_s10  ;;  %s27_s12 = int_to_ptr.vmem [resolvable:$true] %s26_s12 }
   0x4   :  { %s335_s15 = scalar_lea.hbm %s465_s0, 128 }
   0x5   :  { %p336_p0 = scmp.ne.s32.totalorder %s465_s0, %s335_s15  ;;  %p339_p1 = scmp.lt.u32.totalorder %s335_s15, %s465_s0 }
   0x7   :  { %p341_p2 = pnand %p339_p1, %p336_p0 }
   0x9   :  { %344 = shalt.err (!%p341_p2)
}
   0xa   :  { %s345_s20 = scalar_lea.vmem %s17_s10, 128  ;;  %p350_p4 = scmp.lt.s32.totalorder %s17_s10, %s17_s10 }
   0xb   :  { %p346_p3 = scmp.ne.s32.totalorder %s17_s10, %s345_s20  ;;  %p351_p5 = scmp.lt.s32.totalorder %s345_s20, %s345_s20 }
   0xd   :  { %p352_p6 = por %p351_p5, %p350_p4 }
   0xf   :  { %p353_p7 = pnand %p352_p6, %p346_p3 }
  0x11   :  { %356 = shalt.err (!%p353_p7)
}
  0x12   :  { %19 = dma.hbm_to_vmem [thread:$0]  %s465_s0, 128, %s17_s10, [#allocation6]  }
  0x13   :  { %s357_s25 = scalar_lea.hbm %s466_s1, 128 }
  0x14   :  { %p358_p8 = scmp.ne.s32.totalorder %s466_s1, %s357_s25  ;;  %p361_p9 = scmp.lt.u32.totalorder %s357_s25, %s466_s1 }
  0x16   :  { %p363_p10 = pnand %p361_p9, %p358_p8 }
  0x18   :  { %366 = shalt.err (!%p363_p10)
}
  0x19   :  { %s367_s30 = scalar_lea.vmem %s27_s12, 128  ;;  %p372_p12 = scmp.lt.s32.totalorder %s27_s12, %s27_s12 }
  0x1a   :  { %p368_p11 = scmp.ne.s32.totalorder %s27_s12, %s367_s30  ;;  %p373_p13 = scmp.lt.s32.totalorder %s367_s30, %s367_s30 }
  0x1c   :  { %p374_p0 = por %p373_p13, %p372_p12 }
  0x1e   :  { %p375_p1 = pnand %p374_p0, %p368_p11 }
  0x20   :  { %378 = shalt.err (!%p375_p1)
}
  0x21   :  { %29 = dma.hbm_to_vmem [thread:$0]  %s466_s1, 128, %s27_s12, [#allocation9]  }
  0x22   :  { %389 = dma.done.wait [#allocation6], 128  }
  0x23   :  { %390 = vsyncadd [#allocation6], 4294967168 }
  0x24   :  { %391 = dma.done.wait [#allocation9], 128  }
  0x25   :  { %392 = vsyncadd [#allocation9], 4294967168  ;;  %v40_v0 = vld [vmem:[#allocation8] sm:$0xff]  ;;  %vm42_vm0 = vcmask 261120   ;;  %v54_v1 = vld [vmem:[#allocation5] sm:$0xff]  ;;  %v397_v6 = vmov 0.0  }
  0x26   :  { %v41_v2 = vmul.f32 %v40_v0, %v40_v0  ;;  %v55_v3 = vmul.f32 %v54_v1, %v54_v1  ;;  %303 = vmatprep.subr.mxu0 %v397_v6  ;;  %308 = vmatprep.subr.mxu1 %v397_v6  ;;  %vm398_vm1 = vmmov 0   ;;  %vm50_vm2 = vcmask 64512   ;;  %s379_s10 = scalar_lea.hbm %s467_s2, 16 }
  0x27   :  { %305 = vmatprep.mubr.msk.f32.mxu0 %vm398_vm1, %v397_v6  ;;  %310 = vmatprep.mubr.msk.f32.mxu1 %vm398_vm1, %v397_v6  ;;  %51 = vst.msk [vmem:[#allocation3] sm:$0xff] %vm50_vm2, %v397_v6  ;;  %v399_v24 = vmov 1.0   ;;  %vm160_vm3 = vcmask 7168   ;;  %vm52_vm4 = vcmask 0   ;;  %p380_p2 = scmp.ne.s32.totalorder %s467_s2, %s379_s10  ;;  %p383_p3 = scmp.lt.u32.totalorder %s379_s10, %s467_s2 }
  0x28   :  { %v43_v4 = vsel %vm42_vm0, %v41_v2, 0.0  ;;  %v57_v5 = vsel %vm42_vm0, %v55_v3, 0.0  ;;  %53 = vst.msk [vmem:[#allocation4] sm:$0x1] %vm52_vm4, %v397_v6 }
  0x29   :  { %44 = vadd.xlane.f32.xlu0 %v43_v4  ;;  %p385_p4 = pnand %p383_p3, %p380_p2 }
  0x2d   :  { %58 = vadd.xlane.f32.xlu0 %v57_v5 }
  0x2e   :  { %v248_v33 = vld [vmem:[#allocation3] sm:$0xff] }
  0x2f   :  { %v155_v48 = vld [vmem:[#allocation4] sm:$0x1] }
  0xb6   :  { %v45_v7 = vpop.xlane.xlu0 %44 }
  0xb7   :  { %v46_v8 = vmax.f32 %v45_v7, 1e-24 }
  0xb9   :  { %325 = vrsqrt.f32 %v46_v8 }
  0xba   :  { %v59_v9 = vpop.xlane.xlu0 %58 }
  0xbb   :  { %v60_v10 = vmax.f32 %v59_v9, 1e-24 }
  0xbd   :  { %327 = vrsqrt.f32 %v60_v10 }
  0xc3   :  { %v326_v11 = vpop.eup %325 }
  0xc4   :  { %v48_v12 = vmul.f32 %v326_v11, %v40_v0 }
  0xc6   :  { %49 = vst.msk [vmem:[#allocation2] sm:$0xff] %vm42_vm0, %v48_v12 }
  0xc7   :  { %v328_v13 = vpop.eup %327 }
  0xc8   :  { %v62_v14 = vmul.f32 14.285714, %v328_v13 }
  0xca   :  { %v63_v15 = vmul.f32 %v62_v14, %v54_v1 }
  0xcd   :  { %v64_v16 = vld [vmem:[#allocation2] sm:$0xff] }
  0xce   :  { %304 = vmatpush3.xpose.msk.msra.mxu0 %vm42_vm0, %v64_v16  ;;  %v144_v17 = vmul.f32 %v64_v16, %v63_v15 }
  0xd0   :  { %v145_v25 = vsel %vm42_vm0, %v144_v17, 0.0 }
  0xd1   :  { %306 = vmatmul.mubr.msk.f32.vlgmr.msra.gmra.mrb[0].mxu0 %vm42_vm0, %v63_v15 }
 0x1a4   :  { %v137_v18 = vpop.f32.mrb[0].mxu0 }
 0x1a5   :  { %v297_v19 = vadd.f32 -14.285714, %v137_v18  ;;  %v307_v20 = vpop.f32.mrb[1].mxu0 }
 0x1a7   :  { %v149_v21 = vmul.f32 1.442695, %v297_v19 }
 0x1a9   :  { %329 = vpow2.f32 %v149_v21 }
 0x1b3   :  { %v330_v22 = vpop.eup %329 }
 0x1b4   :  { %309 = vmatpush3.msra.mxu1 %v330_v22  ;;  %v152_v23 = vsel %vm50_vm2, %v330_v22, 0.0 }
 0x1b5   :  { %311 = vmatmul.mubr.msk.f32.vlgmr.msra.gmra.mrb[0].mxu1 %vm50_vm2, %v399_v24  ;;  %153 = vadd.xlane.f32.xlu1 %v152_v23 }
 0x1b9   :  { %146 = vadd.xlane.f32.xlu1 %v145_v25 }
 0x242   :  { %v154_v26 = vpop.xlane.xlu1 %153 }
 0x243   :  { %331 = vlog2.f32 %v154_v26 }
 0x246   :  { %v147_v27 = vpop.xlane.xlu1 %146 }
 0x247   :  { %v158_v30 = vmul.f32 2.0, %v147_v27 }
 0x24d   :  { %v332_v28 = vpop.eup %331 }
 0x24e   :  { %v157_v29 = vmul.f32 0.6931472, %v332_v28 }
 0x250   :  { %v159_v31 = vsub.f32 %v157_v29, %v158_v30 }
 0x252   :  { %v161_v32 = vsel %vm160_vm3, %v159_v31, 0.0 }
 0x253   :  { %162 = vadd.xlane.f32.xlu0 %v161_v32 }
 0x288   :  { %v244_v34 = vpop.f32.mrb[0].mxu1 }
 0x289   :  { %v249_v35 = vadd.f32 %v248_v33, %v244_v34  ;;  %v312_v36 = vpop.f32.mrb[1].mxu1 }
 0x28b   :  { %250 = vst.msk [vmem:[#allocation3] sm:$0xff] %vm50_vm2, %v249_v35 }
 0x292   :  { %v254_v37 = vld [vmem:[#allocation3] sm:$0xff] }
 0x293   :  { %333 = vlog2.f32 %v254_v37 }
 0x29d   :  { %v334_v38 = vpop.eup %333 }
 0x29e   :  { %v256_v39 = vmul.f32 0.6931472, %v334_v38 }
 0x2a0   :  { %v257_v40 = vsel %vm50_vm2, %v256_v39, 0.0 }
 0x2a1   :  { %258 = vadd.xlane.f32.xlu1 %v257_v40 }
 0x2e0   :  { %v163_v41 = vpop.xlane.xlu0 %162 }
 0x2e1   :  { %v164_v42 = vrot.slane %v163_v41, 4 }
 0x2e3   :  { %v165_v43 = vadd.f32 %v164_v42, %v163_v41 }
 0x2e5   :  { %v166_v44 = vrot.slane %v165_v43, 2 }
 0x2e7   :  { %v167_v45 = vadd.f32 %v166_v44, %v165_v43 }
 0x2e9   :  { %v168_v46 = vrot.slane %v167_v45, 1 }
 0x2eb   :  { %v169_v47 = vadd.f32 %v168_v46, %v167_v45 }
 0x2ed   :  { %313 = vpush %v169_v47 }
 0x31e   :  { %s314_s1 = spop %313 }
 0x31f   :  { %v171_v49 = vstv %s314_s1 }
 0x320   :  { %v172_v50 = vadd.f32 %v171_v49, %v155_v48 }
 0x322   :  { %174 = vst.msk [vmem:[#allocation4] sm:$0x1] %vm52_vm4, %v172_v50 }
 0x329   :  { %v270_v58 = vld [vmem:[#allocation4] sm:$0x1] }
 0x32a   :  { %v271_v59 = vmul.f32 0.125, %v270_v58 }
 0x32c   :  { %v272_v60 = vmul.f32 0.5, %v271_v59 }
 0x32e   :  { %v259_v51 = vpop.xlane.xlu1 %258 }
 0x32f   :  { %v260_v52 = vrot.slane %v259_v51, 4 }
 0x331   :  { %v261_v53 = vadd.f32 %v260_v52, %v259_v51 }
 0x333   :  { %v262_v54 = vrot.slane %v261_v53, 2 }
 0x335   :  { %v263_v55 = vadd.f32 %v262_v54, %v261_v53 }
 0x337   :  { %v264_v56 = vrot.slane %v263_v55, 1 }
 0x339   :  { %v265_v57 = vadd.f32 %v264_v56, %v263_v55 }
 0x33b   :  { %315 = vpush %v265_v57 }
 0x36c   :  { %s316_s4 = spop %315 }
 0x36d   :  { %s269_s5 = smul.f32 0.015625, %s316_s4 }
 0x36f   :  { %s273_s6 = smul.f32 0.5, %s269_s5 }
 0x371   :  { %v274_v61 = vstv %s273_s6 }
 0x372   :  { %v275_v62 = vadd.f32 %v274_v61, %v272_v60 }
 0x374   :  { %v276_v63 = vadd.f32 14.285714, %v275_v62 }
 0x376   :  { %317 = vpush %v276_v63 }
 0x3a7   :  { %s318_s7 = spop %317 }
 0x3a8   :  { %279 = sst [smem:[#allocation10]] %s318_s7 }
 0x3a9   :  { %388 = shalt.err (!%p385_p4)
}
 0x3aa   :  { %s400_s15 = smov [#allocation10]  }
 0x3ab   :  { %287 = dma.smem_to_hbm %s400_s15, 16, %s467_s2, [#allocation7]  }
 0x3ac   :  { %393 = dma.done.wait [#allocation7], 16  }
 0x3ad   :  { %394 = vsyncadd [#allocation7], 4294967280 }
 0x3ae   :  { %291 = sfence }
 0x3af   :  { %292 = vsyncpa [#allocation6], 1 }
 0x3b0   :  { %293 = vsyncpa [#allocation9], 1 }
 0x3b1   :  { %294 = vsyncpa [#allocation7], 1 }

</bundles_post_ra>
